<compile_context>
chip_gen: v5e
topology: v5e:2x2
jax: 0.10.0
libtpu: 0.0.40
codegen_flags: <defaults>
</compile_context>

<pallas_src>
import math
import jax
import jax.numpy as jnp
from jax import lax
from jax.experimental import pallas as pl
from jax.experimental.pallas import tpu as pltpu


def _round_up(x, m):
    return ((x + m - 1) // m) * m


def _sublane_multiple(dtype):
    # Minimum second-to-last tile dim: 8 (4-byte), 16 (2-byte), 32 (1-byte).
    return max(8, 32 // jnp.dtype(dtype).itemsize)


def _make_linear_kernel(nk, tk, k_rem, out_is_f32):
    """Build the kernel body.

    nk:        number of K grid steps (static)
    tk:        K tile size (static)
    k_rem:     in_dim % tk (static); if nonzero, the last K block contains
               unspecified out-of-bounds values that must be masked.
    out_is_f32: accumulate directly into o_ref (f32) vs. use an f32 scratch.
    """

    def _masked(x_t, w_t, k):
        if k_rem == 0:
            return x_t, w_t
        # Only the K tail needs zeroing; M/N garbage never reaches valid HBM.
        if nk == 1:
            limit = k_rem
        else:
            limit = jnp.where(k == nk - 1, k_rem, tk)
        kx = lax.broadcasted_iota(jnp.int32, x_t.shape, 1)
        kw = lax.broadcasted_iota(jnp.int32, w_t.shape, 0)
        return jnp.where(kx < limit, x_t, 0), jnp.where(kw < limit, w_t, 0)

    if out_is_f32:
        def kernel(x_ref, w_ref, b_ref, o_ref):
            # x_ref: (tm, tk), w_ref: (tk, tn), b_ref: (1, tn), o_ref: (tm, tn)
            k = pl.program_id(2)

            @pl.when(k == 0)
            def _():
                # Fold the bias into the accumulator init.
                o_ref[...] = jnp.broadcast_to(
                    b_ref[...].astype(jnp.float32), o_ref.shape)

            x_t, w_t = _masked(x_ref[...], w_ref[...], k)
            o_ref[...] += jnp.dot(x_t, w_t, preferred_element_type=jnp.float32)

        return kernel

    def kernel(x_ref, w_ref, b_ref, o_ref, acc_ref):
        k = pl.program_id(2)

        @pl.when(k == 0)
        def _():
            acc_ref[...] = jnp.broadcast_to(
                b_ref[...].astype(jnp.float32), acc_ref.shape)

        x_t, w_t = _masked(x_ref[...], w_ref[...], k)
        acc_ref[...] += jnp.dot(x_t, w_t, preferred_element_type=jnp.float32)

        @pl.when(k == nk - 1)
        def _():
            o_ref[...] = acc_ref[...].astype(o_ref.dtype)

    return kernel


def linear_norm(x, weight, bias=None, *, tm=512, tn=512, tk=1024,
                compute_dtype=None):
    """y = x @ weight.T + bias, matching torch.nn.Linear semantics.

    x:      (..., in_dim)
    weight: (out_dim, in_dim)   -- PyTorch layout
    bias:   (out_dim,) or None
    compute_dtype: optionally cast x/weight (e.g. jnp.bfloat16) before the
        MXU contraction; accumulation stays in f32.

    Per-chip tuning (review): v6e bf16 prefers tm=tn=1024; v7x 512-768 with
    total VMEM kept <= ~48 MiB; v5e 512 suffices.  Defaults (512,512,1024)
    are safe and near-roofline on all three.
    """
    *lead, in_dim = x.shape
    out_dim, w_in = weight.shape
    assert w_in == in_dim, (weight.shape, in_dim)
    m = int(math.prod(lead)) if lead else 1
    out_dtype = x.dtype

    if bias is None:
        bias = jnp.zeros((out_dim,), dtype=out_dtype)

    x2d = x.reshape(m, in_dim)
    # One-time parameter-layout change (weight is a parameter, amortized to
    # ~zero under jit): (out,in) -> (in,out) so the kernel contracts K with a
    # standard MXU matmul and no per-step transposes.
    w_t = weight.T                      # (in_dim, out_dim)
    b2d = bias.reshape(1, out_dim)

    if compute_dtype is not None:
        x2d = x2d.astype(compute_dtype)
        w_t = w_t.astype(compute_dtype)

    in_dtype = x2d.dtype
    sub = _sublane_multiple(in_dtype)

    # Clamp tiles to the (aligned) problem size; keep lane/sublane rules.
    tm = min(tm, _round_up(m, sub))
    tn = min(tn, _round_up(out_dim, 128))
    tk = min(tk, _round_up(in_dim, 128))

    nm = (m + tm - 1) // tm
    nn = (out_dim + tn - 1) // tn
    nk = (in_dim + tk - 1) // tk
    k_rem = in_dim % tk

    out_is_f32 = jnp.dtype(out_dtype) == jnp.dtype(jnp.float32)
    kernel = _make_linear_kernel(nk, tk, k_rem, out_is_f32)
    scratch_shapes = [] if out_is_f32 else [pltpu.VMEM((tm, tn), jnp.float32)]

    in_itemsize = jnp.dtype(in_dtype).itemsize
    out_itemsize = jnp.dtype(out_dtype).itemsize
    # Double-buffered inputs + double-buffered output (+ f32 acc if needed).
    vmem_needed = (
        2 * (tm * tk + tk * tn + tn) * in_itemsize
        + 2 * tm * tn * out_itemsize
        + (0 if out_is_f32 else tm * tn * 4)
    )
    vmem_limit = int(min(max(vmem_needed * 3 // 2, 32 << 20), 56 << 20))

    cost = pl.CostEstimate(
        flops=2 * m * out_dim * in_dim,
        transcendentals=0,
        bytes_accessed=(m * in_dim + in_dim * out_dim) * in_itemsize
        + (m * out_dim + out_dim) * out_itemsize,
    )

    out = pl.pallas_call(
        kernel,
        out_shape=jax.ShapeDtypeStruct((m, out_dim), out_dtype),
        grid_spec=pltpu.PrefetchScalarGridSpec(
            num_scalar_prefetch=0,
            grid=(nm, nn, nk),
            in_specs=[
                pl.BlockSpec((tm, tk), lambda i, j, k: (i, k)),   # x tile
                pl.BlockSpec((tk, tn), lambda i, j, k: (k, j)),   # W^T tile
                pl.BlockSpec((1, tn), lambda i, j, k: (0, j)),    # bias tile
            ],
            out_specs=pl.BlockSpec((tm, tn), lambda i, j, k: (i, j)),
            scratch_shapes=scratch_shapes,
        ),
        compiler_params=pltpu.CompilerParams(
            dimension_semantics=("parallel", "parallel", "arbitrary"),
            vmem_limit_bytes=vmem_limit,
        ),
        cost_estimate=cost,
    )(x2d, w_t, b2d)

    return out.reshape(*lead, out_dim)


_GAINS = {"linear": 1.0, "sigmoid": 1.0, "tanh": 5.0 / 3.0,
          "relu": math.sqrt(2.0)}


def init_linear_norm_params(key, in_dim, out_dim, w_init_gain="linear",
                            dtype=jnp.float32):
    """Deterministic xavier_uniform_ init matching the PyTorch module."""
    gain = _GAINS.get(w_init_gain, 1.0)
    bound = gain * math.sqrt(6.0 / (in_dim + out_dim))
    k_w, k_b = jax.random.split(key)
    weight = jax.random.uniform(
        k_w, (out_dim, in_dim), minval=-bound, maxval=bound, dtype=dtype)
    # torch Linear default bias init: U(-1/sqrt(fan_in), 1/sqrt(fan_in))
    b_bound = 1.0 / math.sqrt(in_dim)
    bias = jax.random.uniform(
        k_b, (out_dim,), minval=-b_bound, maxval=b_bound, dtype=dtype)
    return weight, bias


if __name__ == "__main__":
    key = jax.random.PRNGKey(0)
    k_x, k_p, k_x2, k_p2 = jax.random.split(key, 4)

    # Small demo matching module usage: (batch, seq, in_dim) -> (..., out_dim)
    batch, seq, in_dim, out_dim = 2, 8, 32, 32
    x = jax.random.normal(k_x, (batch, seq, in_dim), dtype=jnp.float32)
    weight, bias = init_linear_norm_params(k_p, in_dim, out_dim)

    y = jax.block_until_ready(linear_norm(x, weight, bias))
    y_ref = x @ weight.T + bias
    assert y.shape == (batch, seq, out_dim)
    assert jnp.allclose(y, y_ref, atol=1e-5, rtol=1e-5)

    # Multi-step K reduction with ragged K tail (2304 = 2*1024 + 256) and a
    # partial N block: exercises the in-kernel K mask and accumulation.
    m2, in2, out2 = 64, 2304, 160
    x2 = jax.random.normal(k_x2, (m2, in2), dtype=jnp.float32)
    w2, b2 = init_linear_norm_params(k_p2, in2, out2)
    y2 = jax.block_until_ready(linear_norm(x2, w2, b2))
    y2_ref = jnp.dot(x2, w2.T, precision=lax.Precision.HIGHEST) + b2
    assert jnp.allclose(y2, y2_ref, atol=2e-2, rtol=2e-2)

    # bf16 path: exercises the f32 accumulator scratch + final cast and the
    # dtype-aware (16,128) sublane tiling.
    y3 = jax.block_until_ready(
        linear_norm(x.astype(jnp.bfloat16), weight.astype(jnp.bfloat16),
                    bias.astype(jnp.bfloat16)))
    assert jnp.allclose(y3.astype(jnp.float32), y_ref, atol=5e-2, rtol=5e-2)

    print("KERNEL_OK")
</pallas_src>

<mosaic_0001>
module attributes {stable_mosaic.version = 11 : i64} {
  func.func @kernel(%arg0: i32, %arg1: i32, %arg2: i32, %arg3: memref<16x128xf32, #tpu.memory_space<vmem>>, %arg4: memref<128x128xf32, #tpu.memory_space<vmem>>, %arg5: memref<1x128xf32, #tpu.memory_space<vmem>>, %arg6: memref<16x128xf32, #tpu.memory_space<vmem>>) attributes {dimension_semantics = [#tpu.dimension_semantics<parallel>, #tpu.dimension_semantics<parallel>, #tpu.dimension_semantics<arbitrary>], iteration_bounds = array<i64: 1, 1, 1>, scalar_prefetch = 0 : i64, scratch_operands = 0 : i64, tpu.core_type = #tpu.core_type<tc>, window_params = [{transform_indices = @transform_0, window_bounds = array<i64: 16, 128>}, {transform_indices = @transform_1, window_bounds = array<i64: 128, 128>}, {transform_indices = @transform_2, window_bounds = array<i64: 1, 128>}, {transform_indices = @transform_3, window_bounds = array<i64: 16, 128>}]} {
    %c0_i32 = arith.constant 0 : i32
    %0 = arith.cmpi eq, %arg2, %c0_i32 : i32
    %1 = arith.extui %0 : i1 to i32
    %c0_i32_0 = arith.constant 0 : i32
    %2 = arith.cmpi ne, %1, %c0_i32_0 : i32
    scf.if %2 {
      %c0_11 = arith.constant 0 : index
      %c0_12 = arith.constant 0 : index
      %21 = vector.load %arg5[%c0_11, %c0_12] : memref<1x128xf32, #tpu.memory_space<vmem>>, vector<1x128xf32>
      %22 = vector.shape_cast %21 : vector<1x128xf32> to vector<1x128xf32>
      %23 = vector.broadcast %22 : vector<1x128xf32> to vector<16x128xf32>
      %c0_13 = arith.constant 0 : index
      %c0_14 = arith.constant 0 : index
      %24 = vector.load %arg6[%c0_13, %c0_14] : memref<16x128xf32, #tpu.memory_space<vmem>>, vector<16x128xf32>
      tpu.vector_store %arg6[%c0_13, %c0_14], %23 {strides = array<i32>} : memref<16x128xf32, #tpu.memory_space<vmem>>, vector<16x128xf32>,
    } else {
    }
    %c0 = arith.constant 0 : index
    %c0_1 = arith.constant 0 : index
    %3 = vector.load %arg3[%c0, %c0_1] : memref<16x128xf32, #tpu.memory_space<vmem>>, vector<16x128xf32>
    %c0_2 = arith.constant 0 : index
    %c0_3 = arith.constant 0 : index
    %4 = vector.load %arg4[%c0_2, %c0_3] : memref<128x128xf32, #tpu.memory_space<vmem>>, vector<128x128xf32>
    %5 = tpu.iota {dimensions = array<i32: 1>} : vector<16x128xi32>
    %6 = tpu.iota {dimensions = array<i32: 0>} : vector<128x128xi32>
    %c32_i32 = arith.constant 32 : i32
    %7 = vector.broadcast %c32_i32 : i32 to vector<16x128xi32>
    %8 = arith.cmpi slt, %5, %7 : vector<16x128xi32>
    %c0_i32_4 = arith.constant 0 : i32
    %9 = arith.sitofp %c0_i32_4 : i32 to f32
    %10 = vector.broadcast %9 : f32 to vector<16x128xf32>
    %11 = arith.select %8, %3, %10 : vector<16x128xi1>, vector<16x128xf32>
    %c32_i32_5 = arith.constant 32 : i32
    %12 = vector.broadcast %c32_i32_5 : i32 to vector<128x128xi32>
    %13 = arith.cmpi slt, %6, %12 : vector<128x128xi32>
    %c0_i32_6 = arith.constant 0 : i32
    %14 = arith.sitofp %c0_i32_6 : i32 to f32
    %15 = vector.broadcast %14 : f32 to vector<128x128xf32>
    %16 = arith.select %13, %4, %15 : vector<128x128xi1>, vector<128x128xf32>
    %c0_7 = arith.constant 0 : index
    %c0_8 = arith.constant 0 : index
    %17 = vector.load %arg6[%c0_7, %c0_8] : memref<16x128xf32, #tpu.memory_space<vmem>>, vector<16x128xf32>
    %cst = arith.constant dense<0.000000e+00> : vector<16x128xf32>
    %18 = tpu.matmul %11, %16, %cst {dimension_numbers = #tpu.dot_dimension_numbers<[1], [0], [0], [1], [0, 0, 1, 1], [], []>} : vector<16x128xf32>, vector<128x128xf32>, vector<16x128xf32> -> vector<16x128xf32>
    %19 = arith.addf %17, %18 : vector<16x128xf32>
    %c0_9 = arith.constant 0 : index
    %c0_10 = arith.constant 0 : index
    %20 = vector.load %arg6[%c0_9, %c0_10] : memref<16x128xf32, #tpu.memory_space<vmem>>, vector<16x128xf32>
    tpu.vector_store %arg6[%c0_9, %c0_10], %19 {strides = array<i32>} : memref<16x128xf32, #tpu.memory_space<vmem>>, vector<16x128xf32>,
    return
  }
  func.func @transform_0(%arg0: i32, %arg1: i32, %arg2: i32) -> (i32, i32) {
    %c0_i32 = arith.constant 0 : i32
    return %arg0, %arg2 : i32, i32
  }
  func.func @transform_1(%arg0: i32, %arg1: i32, %arg2: i32) -> (i32, i32) {
    %c0_i32 = arith.constant 0 : i32
    return %arg2, %arg1 : i32, i32
  }
  func.func @transform_2(%arg0: i32, %arg1: i32, %arg2: i32) -> (i32, i32) {
    %c0_i32 = arith.constant 0 : i32
    %c0_i32_0 = arith.constant 0 : i32
    return %c0_i32, %arg1 : i32, i32
  }
  func.func @transform_3(%arg0: i32, %arg1: i32, %arg2: i32) -> (i32, i32) {
    %c0_i32 = arith.constant 0 : i32
    return %arg0, %arg1 : i32, i32
  }
}

</mosaic_0001>

<bundles_post_ra>
// kernel: tpu_custom_call.1
= control target key start
LH: loop header
LB: loop body
LE: loop exit
PB: predicated region body
PF: predicated region fallthrough
CT: control target
= control target key end

     0   :  { %8 = vsyncpa [#allocation3], 0  ;;  %s314_s0 = inlined_call_operand.hbm [shape: f32[16,32], index: 0, kind: input, shape index: {}]   ;;  %s315_s1 = inlined_call_operand.hbm [shape: f32[32,32], index: 1, kind: input, shape index: {}]   ;;  %s316_s2 = inlined_call_operand.vmem [shape: f32[1,32], index: 2, kind: input, shape index: {}]   ;;  %s317_s3 = inlined_call_operand.hbm [shape: f32[16,32], index: 3, kind: output, shape index: {}]  }
   0x1   :  { %9 = vsyncpa [#allocation6], 0 }
   0x2   :  { %10 = vsyncpa [#allocation4], 0  ;;  %s15_s14 = sshll.u32 %s314_s0, 4  ;;  %s268_s15 = smov [#allocation2]   ;;  %s16_s14 = int_to_ptr.hbm [resolvable:$true] %s15_s14 }
   0x3   :  { %s17_s16 = sshll.u32 %s268_s15, 4  ;;  %s269_s17 = smov 128   ;;  %s18_s16 = int_to_ptr.vmem [resolvable:$true] %s17_s16 }
   0x4   :  { %s270_s18 = smov 8  }
   0x5   :  { %23 = dma.hbm_to_vmem [thread:$0]  %s16_s14, 256, %s18_s16, [#allocation3], %s269_s17, %s269_s17, %s270_s18  }
   0x6   :  { %27 = vsyncadd [#allocation6], 1536  ;;  %s28_s21 = sshll.u32 %s315_s1, 4  ;;  %s271_s22 = smov [#allocation5]   ;;  %s29_s21 = int_to_ptr.hbm [resolvable:$true] %s28_s21 }
   0x7   :  { %s30_s23 = sshll.u32 %s271_s22, 4  ;;  %s31_s23 = int_to_ptr.vmem [resolvable:$true] %s30_s23 }
   0x8   :  { %36 = dma.hbm_to_vmem [thread:$0]  %s29_s21, 512, %s31_s23, [#allocation6], %s269_s17, %s269_s17, %s270_s18  }
   0x9   :  { %262 = dma.done.wait [#allocation3], 256  }
   0xa   :  { %263 = vsyncadd [#allocation3], 4294967040 }
   0xb   :  { %264 = dma.done.wait [#allocation6], 2048  }
   0xc   :  { %265 = vsyncadd [#allocation6], 4294965248  ;;  %v75_v0 = vlaneseq  ;;  %v62_v1 = vld [vmem:[#allocation5 + $0x18] sm:$0xff]  ;;  %v61_v2 = vld [vmem:[#allocation5 + $0x10] sm:$0xff]  ;;  %s272_s24 = smov [#allocation7]   ;;  %s164_s28 = sshll.u32 %s317_s3, 4  ;;  %s165_s28 = int_to_ptr.hbm [resolvable:$true] %s164_s28 }
   0xd   :  { %143 = vmatpush.msra.mxu0 %v62_v1  ;;  %180 = vmatpush.msra.mxu1 %v62_v1  ;;  %v60_v4 = vld [vmem:[#allocation5 + $0x8] sm:$0xff]  ;;  %v59_v5 = vld [vmem:[#allocation5] sm:$0xff]  ;;  %v57_v6 = vld [vmem:[#allocation2] sm:$0xff]  ;;  %s162_s25 = sshll.u32 %s272_s24, 4  ;;  %s163_s25 = int_to_ptr.vmem [resolvable:$true] %s162_s25 }
   0xe   :  { %v76_v3 = vand.u32 127, %v75_v0  ;;  %v58_v7 = vld [vmem:[#allocation2 + $0x8] sm:$0xff]  ;;  %v189_v8 = vld [vmem:[%s316_s2] ss:$0 sm:$0xff] }
   0xf   :  { %144 = vmatpush.msra.mxu0 %v61_v2  ;;  %181 = vmatpush.msra.mxu1 %v61_v2 }
  0x10   :  { %vm94_vm0 = vcmp.lt.s32.totalorder %v76_v3, 32 }
  0x11   :  { %145 = vmatpush.msra.mxu0 %v60_v4  ;;  %182 = vmatpush.msra.mxu1 %v60_v4 }
  0x13   :  { %146 = vmatpush.msra.mxu0 %v59_v5  ;;  %183 = vmatpush.msra.mxu1 %v59_v5 }
  0x14   :  { %178 = vmatmul.msk.f32.vlgmr.msra.gmra.mxu0 %vm94_vm0, %v57_v6  ;;  %179 = vmatmul.msk.f32.vlgmr.msra.gmra.mxu1 %vm94_vm0, %v58_v7 }
  0x91   :  { %v148_v9 = vpop.f32.mrf.mxu0  ;;  %v151_v10 = vpop.f32.mrf.mxu1 }
  0x92   :  { %v154_v11 = vadd.f32 %v189_v8, %v148_v9  ;;  %v155_v12 = vadd.f32 %v189_v8, %v151_v10 }
  0x94   :  { %156 = vst [vmem:[#allocation7] sm:$0xff] %v154_v11 }
  0x95   :  { %157 = vst [vmem:[#allocation7 + $0x8] sm:$0xff] %v155_v12 }
  0x96   :  { %170 = dma.vmem_to_hbm [thread:$0]  %s163_s25, 256, %s165_s28, [#allocation4], %s269_s17, %s269_s17, %s270_s18  }
  0x97   :  { %266 = dma.done.wait [#allocation4], 256  }
  0x98   :  { %267 = vsyncadd [#allocation4], 4294967040 }
  0x99   :  { %175 = vsyncpa [#allocation3], 1 }
  0x9a   :  { %176 = vsyncpa [#allocation6], 1 }
  0x9b   :  { %177 = vsyncpa [#allocation4], 1 }

</bundles_post_ra>
